<compile_context>
chip_gen: v5e
topology: v5e:2x2
jax: 0.10.0
libtpu: 0.0.40
codegen_flags: <defaults>
</compile_context>

<pallas_src>
import math

import jax
import jax.numpy as jnp
from jax.experimental import pallas as pl
from jax.experimental.pallas import tpu as pltpu


def _round_up(n: int, m: int) -> int:
    return ((n + m - 1) // m) * m


def _sin_pos_emb_kernel(x_ref, freq_ref, o_ref):
    # x_ref:    (TN, 1)   positions for this row tile
    # freq_ref: (1, D)    [freq_half, freq_half]  (tile-invariant, preloaded)
    # o_ref:    (TN, D)   output: cols [0, D/2) = sin, cols [D/2, D) = cos
    x = x_ref[...]                      # (TN, 1) f32
    freq = freq_ref[...]                # (1, D)  f32
    D = o_ref.shape[-1]
    half = D // 2

    arg = x * freq                      # broadcast -> (TN, D), VPU

    # Column selector (tile-invariant): first half -> sin, second half -> cos.
    col = jax.lax.broadcasted_iota(jnp.int32, (1, D), 1)
    mask = jnp.broadcast_to(col < half, arg.shape)

    o_ref[...] = jnp.where(mask, jnp.sin(arg), jnp.cos(arg)).astype(o_ref.dtype)


def sinusoidal_pos_emb(x, dim: int, *, tile_n: int = 512):
    """x: (N,) positions/timesteps (any numeric dtype). Returns (N, 2*(dim//2)) f32."""
    N = int(x.shape[0])
    half = dim // 2
    out_dim = 2 * half

    # Tile-invariant frequency row, computed once in the wrapper (tiny).
    scale = (math.log(10000.0) / (half - 1)) if half > 1 else 1.0
    freq_half = jnp.exp(jnp.arange(half, dtype=jnp.float32) * -scale)
    freq = jnp.concatenate([freq_half, freq_half]).reshape(1, out_dim)

    # 8-aligned row tile; pad N up so every block is full (padding sliced off).
    TN = min(tile_n, _round_up(max(N, 1), 8))
    N_pad = _round_up(N, TN)
    xf = x.astype(jnp.float32).reshape(N, 1)
    if N_pad != N:
        xf = jnp.pad(xf, ((0, N_pad - N), (0, 0)))

    grid = (N_pad // TN,)
    out = pl.pallas_call(
        _sin_pos_emb_kernel,
        out_shape=jax.ShapeDtypeStruct((N_pad, out_dim), jnp.float32),
        grid=grid,
        in_specs=[
            pl.BlockSpec((TN, 1), lambda i: (i, 0)),          # positions tile
            pl.BlockSpec((1, out_dim), lambda i: (0, 0)),     # constant freq row
        ],
        out_specs=pl.BlockSpec((TN, out_dim), lambda i: (i, 0)),
        compiler_params=pltpu.CompilerParams(
            dimension_semantics=("parallel",)),
        cost_estimate=pl.CostEstimate(
            flops=2 * N_pad * out_dim,
            transcendentals=2 * N_pad * out_dim,
            bytes_accessed=4 * (N_pad + out_dim + N_pad * out_dim)),
    )(xf, freq)

    return out[:N]


def _reference(x, dim: int):
    """Pure-JAX reference matching the PyTorch module."""
    half = dim // 2
    scale = (math.log(10000.0) / (half - 1)) if half > 1 else 1.0
    freq = jnp.exp(jnp.arange(half, dtype=jnp.float32) * -scale)
    emb = x.astype(jnp.float32)[:, None] * freq[None, :]
    return jnp.concatenate([jnp.sin(emb), jnp.cos(emb)], axis=-1)


if __name__ == "__main__":
    N, dim = 8, 32
    key = jax.random.PRNGKey(0)
    # Diffusion-style timesteps (kept moderate so f32 sin/cos comparisons are tight).
    x = jax.random.uniform(key, (N,), jnp.float32, 0.0, 10.0)

    out = jax.block_until_ready(sinusoidal_pos_emb(x, dim))
    assert out.shape == (N, dim), out.shape

    ref = _reference(x, dim)
    if not jnp.allclose(out, ref, atol=1e-5, rtol=1e-5):
        raise AssertionError("Pallas kernel output does not match reference")

    print("KERNEL_OK")
</pallas_src>

<mosaic_0001>
module attributes {stable_mosaic.version = 11 : i64} {
  func.func @_sin_pos_emb_kernel(%arg0: i32, %arg1: memref<8x1xf32, #tpu.memory_space<vmem>>, %arg2: memref<1x32xf32, #tpu.memory_space<vmem>>, %arg3: memref<8x32xf32, #tpu.memory_space<vmem>>) attributes {dimension_semantics = [#tpu.dimension_semantics<parallel>], iteration_bounds = array<i64: 1>, scalar_prefetch = 0 : i64, scratch_operands = 0 : i64, tpu.core_type = #tpu.core_type<tc>, window_params = [{transform_indices = @transform_0, window_bounds = array<i64: 8, 1>}, {pipeline_mode = #tpu.pipeline_mode<synchronous>, transform_indices = @transform_1, window_bounds = array<i64: 1, 32>}, {transform_indices = @transform_2, window_bounds = array<i64: 8, 32>}]} {
    %c0 = arith.constant 0 : index
    %c0_0 = arith.constant 0 : index
    %0 = vector.load %arg1[%c0, %c0_0] : memref<8x1xf32, #tpu.memory_space<vmem>>, vector<8x1xf32>
    %c0_1 = arith.constant 0 : index
    %c0_2 = arith.constant 0 : index
    %1 = vector.load %arg2[%c0_1, %c0_2] : memref<1x32xf32, #tpu.memory_space<vmem>>, vector<1x32xf32>
    %2 = vector.broadcast %0 : vector<8x1xf32> to vector<8x32xf32>
    %3 = vector.broadcast %1 : vector<1x32xf32> to vector<8x32xf32>
    %4 = arith.mulf %2, %3 : vector<8x32xf32>
    %5 = tpu.iota {dimensions = array<i32: 1>} : vector<1x32xi32>
    %c16_i32 = arith.constant 16 : i32
    %6 = vector.broadcast %c16_i32 : i32 to vector<1x32xi32>
    %7 = arith.cmpi slt, %5, %6 : vector<1x32xi32>
    %8 = vector.shape_cast %7 : vector<1x32xi1> to vector<1x32xi1>
    %9 = vector.broadcast %8 : vector<1x32xi1> to vector<8x32xi1>
    %10 = math.sin %4 : vector<8x32xf32>
    %11 = math.cos %4 : vector<8x32xf32>
    %12 = arith.select %9, %10, %11 : vector<8x32xi1>, vector<8x32xf32>
    %c0_3 = arith.constant 0 : index
    %c0_4 = arith.constant 0 : index
    %13 = vector.load %arg3[%c0_3, %c0_4] : memref<8x32xf32, #tpu.memory_space<vmem>>, vector<8x32xf32>
    tpu.vector_store %arg3[%c0_3, %c0_4], %12 {strides = array<i32>} : memref<8x32xf32, #tpu.memory_space<vmem>>, vector<8x32xf32>,
    return
  }
  func.func @transform_0(%arg0: i32) -> (i32, i32) {
    %c0_i32 = arith.constant 0 : i32
    %c0_i32_0 = arith.constant 0 : i32
    return %arg0, %c0_i32 : i32, i32
  }
  func.func @transform_1(%arg0: i32) -> (i32, i32) {
    %c0_i32 = arith.constant 0 : i32
    %c0_i32_0 = arith.constant 0 : i32
    %c0_i32_1 = arith.constant 0 : i32
    return %c0_i32, %c0_i32_0 : i32, i32
  }
  func.func @transform_2(%arg0: i32) -> (i32, i32) {
    %c0_i32 = arith.constant 0 : i32
    %c0_i32_0 = arith.constant 0 : i32
    return %arg0, %c0_i32 : i32, i32
  }
}

</mosaic_0001>

<bundles_post_ra>
// kernel: tpu_custom_call.1
= control target key start
LH: loop header
LB: loop body
LE: loop exit
PB: predicated region body
PF: predicated region fallthrough
CT: control target
= control target key end

     0   :  { %v398_v1 = vmov 0   ;;  %s493_s0 = inlined_call_operand.vmem [shape: f32[8,1], index: 0, kind: input, shape index: {}]   ;;  %s494_s1 = inlined_call_operand.vmem [shape: f32[1,32], index: 1, kind: input, shape index: {}]   ;;  %s495_s2 = inlined_call_operand.hbm [shape: f32[8,32], index: 2, kind: output, shape index: {}]  }
   0x1   :  { %v12_v0 = vld [vmem:[%s493_s0] sm:$0xff]  ;;  %370 = vset.pattern.permute.xlu0 %v398_v1 }
   0x2   :  { %16 = vperm.xlu0 %370, %v12_v0  }
   0x3   :  { %7 = vsyncpa [#allocation3], 0  ;;  %v371_v2 = vld [vmem:[%s494_s1] ss:$0 sm:$0xff]  ;;  %v399_v16 = vmov 683565275  }
   0x4   :  { %v400_v18 = vmov 2475754826   ;;  %v401_v21 = vmov 2131351028   ;;  %v402_v24 = vmov 2102212464  }
   0x5   :  { %v403_v27 = vmov 920167782   ;;  %v404_v30 = vmov 1326507024   ;;  %s405_s0 = smov [#allocation2]   ;;  %s347_s15 = sshll.u32 %s495_s2, 4  ;;  %s348_s15 = int_to_ptr.hbm [resolvable:$true] %s347_s15 }
   0x6   :  { %s345_s1 = sshll.u32 %s405_s0, 4  ;;  %s346_s1 = int_to_ptr.vmem [resolvable:$true] %s345_s1 }
  0x74   :  { %v17_v3 = vpop.permute.xlu0 %16 }
  0x75   :  { %v428_v4 = vmul.f32 %v371_v2, %v17_v3 }
  0x77   :  { %v31_v5 = vand.u32 2139095040, %v428_v4  ;;  %v28_v8 = vand.u32 2147483647, %v428_v4  ;;  %vm30_vm12 = vcmp.lt.s32.totalorder %v428_v4, 0 }
  0x79   :  { %v32_v6 = vshrl.u32 %v31_v5, 23  ;;  %v35_v10 = vand.u32 8388607, %v28_v8  ;;  %vm29_vm13 = vcmp.le.f32.partialorder %v28_v8, 0.7853982 }
  0x7b   :  { %v356_v7 = vadd.s32 4294967169, %v32_v6  ;;  %v36_v14 = vor.u32 8388608, %v35_v10 }
  0x7d   :  { %v38_v9 = vadd.s32 1, %v356_v7  ;;  %v445_v37 = vshll.u32 %v36_v14, 8 }
  0x7f   :  { %vm39_vm0 = vcmp.gt.s32.totalorder %v38_v9, 0  ;;  %v77_v46 = vand.u32 65535, %v445_v37  ;;  %v78_v47 = vshrl.u32 %v445_v37, 16 }
  0x80   :  { %v40_v11 = vsel %vm39_vm0, %v38_v9, 0 }
  0x81   :  { %v42_v12 = vand.u32 31, %v40_v11  ;;  %v436_v15 = vshrl.u32 %v40_v11, 5 }
  0x83   :  { %v434_v13 = vsub.s32 32, %v42_v12  ;;  %v45_v17 = vshll.u32 %v399_v16, %v42_v12  ;;  %v48_v19 = vshll.u32 %v400_v18, %v42_v12  ;;  %v51_v23 = vshll.u32 %v401_v21, %v42_v12 }
  0x84   :  { %v54_v26 = vshll.u32 %v402_v24, %v42_v12  ;;  %v57_v29 = vshll.u32 %v403_v27, %v42_v12  ;;  %vm60_vm1 = vcmp.lt.s32.totalorder %v436_v15, 1  ;;  %vm63_vm2 = vcmp.lt.s32.totalorder %v436_v15, 4 }
  0x85   :  { %v46_v20 = vshrl.u32 %v400_v18, %v434_v13  ;;  %v49_v22 = vshrl.u32 %v401_v21, %v434_v13  ;;  %v52_v25 = vshrl.u32 %v402_v24, %v434_v13  ;;  %v55_v28 = vshrl.u32 %v403_v27, %v434_v13 }
  0x86   :  { %v58_v31 = vshrl.u32 %v404_v30, %v434_v13  ;;  %vm62_vm3 = vcmp.lt.s32.totalorder %v436_v15, 3  ;;  %vm61_vm4 = vcmp.lt.s32.totalorder %v436_v15, 2  ;;  %v44_v11 = vshrl.u32 %v399_v16, %v434_v13 }
  0x87   :  { %v47_v32 = vor.u32 %v46_v20, %v45_v17  ;;  %v50_v33 = vor.u32 %v49_v22, %v48_v19  ;;  %v53_v34 = vor.u32 %v52_v25, %v51_v23  ;;  %v56_v35 = vor.u32 %v55_v28, %v54_v26 }
  0x88   :  { %v59_v36 = vor.u32 %v58_v31, %v57_v29 }
  0x89   :  { %v68_v38 = vsel %vm60_vm1, %v47_v32, %v50_v33  ;;  %v72_v39 = vsel %vm60_vm1, %v50_v33, %v53_v34  ;;  %v69_v40 = vsel %vm63_vm2, %v56_v35, 920167782  ;;  %v65_v7 = vsel %vm63_vm2, %v53_v34, 2102212464 }
  0x8a   :  { %v73_v41 = vsel %vm63_vm2, %v59_v36, 1326507024  ;;  %v70_v42 = vsel %vm62_vm3, %v53_v34, %v69_v40  ;;  %v64_v20 = vsel %vm60_vm1, %v44_v11, %v47_v32  ;;  %v66_v21 = vsel %vm62_vm3, %v50_v33, %v65_v7 }
  0x8b   :  { %v74_v43 = vsel %vm62_vm3, %v56_v35, %v73_v41  ;;  %v71_v44 = vsel %vm61_vm4, %v68_v38, %v70_v42  ;;  %v67_v13 = vsel %vm61_vm4, %v64_v20, %v66_v21 }
  0x8c   :  { %v75_v45 = vsel %vm61_vm4, %v72_v39, %v74_v43  ;;  %v101_v50 = vand.u32 65535, %v71_v44  ;;  %v102_v51 = vshrl.u32 %v71_v44, 16  ;;  %v121_v28 = vmul.u32 %v445_v37, %v67_v13 }
  0x8d   :  { %v79_v48 = vand.u32 65535, %v75_v45  ;;  %v80_v49 = vshrl.u32 %v75_v45, 16 }
  0x8e   :  { %v104_v54 = vmul.u32 %v102_v51, %v77_v46  ;;  %v105_v55 = vmul.u32 %v101_v50, %v78_v47  ;;  %v103_v59 = vmul.u32 %v101_v50, %v77_v46  ;;  %v106_v63 = vmul.u32 %v102_v51, %v78_v47 }
  0x8f   :  { %v82_v52 = vmul.u32 %v80_v49, %v77_v46  ;;  %v83_v53 = vmul.u32 %v79_v48, %v78_v47  ;;  %v81_v56 = vmul.u32 %v79_v48, %v77_v46  ;;  %v84_v58 = vmul.u32 %v80_v49, %v78_v47 }
  0x90   :  { %v107_v60 = vshll.u32 %v104_v54, 16  ;;  %v109_v2 = vshll.u32 %v105_v55, 16  ;;  %v108_v18 = vshrl.u32 %v104_v54, 16  ;;  %v110_v24 = vshrl.u32 %v105_v55, 16 }
  0x91   :  { %v85_v57 = vshll.u32 %v82_v52, 16  ;;  %v87_v61 = vshll.u32 %v83_v53, 16  ;;  %v86_v12 = vshrl.u32 %v82_v52, 16  ;;  %v88_v22 = vshrl.u32 %v83_v53, 16 }
  0x92   :  { %vm111_vm6 = vc.u32 %v103_v59, %v107_v60  ;;  %v113_v3 = vadd.s32 %v107_v60, %v103_v59 }
  0x93   :  { %vm89_vm5 = vc.u32 %v81_v56, %v85_v57  ;;  %v91_v62 = vadd.s32 %v85_v57, %v81_v56  ;;  %v112_v6 = vsel %vm111_vm6, 1, %v398_v1  ;;  %vm338_vm6 = vcmask 261120  }
  0x94   :  { %v90_v0 = vsel %vm89_vm5, 1, %v398_v1  ;;  %v114_v10 = vadd.s32 %v112_v6, %v106_v63  ;;  %vm115_vm8 = vc.u32 %v113_v3, %v109_v2  ;;  %v117_v27 = vadd.s32 %v113_v3, %v109_v2 }
  0x95   :  { %v92_v5 = vadd.s32 %v90_v0, %v84_v58  ;;  %vm93_vm7 = vc.u32 %v91_v62, %v87_v61  ;;  %v116_v17 = vsel %vm115_vm8, 1, %v398_v1  ;;  %v23_v3 = vlaneseq }
  0x96   :  { %v94_v9 = vsel %vm93_vm7, 1, %v398_v1  ;;  %v118_v19 = vadd.s32 %v116_v17, %v114_v10  ;;  %vm171_vm5 = vweird.f32 %v428_v4 }
  0x97   :  { %v96_v14 = vadd.s32 %v94_v9, %v92_v5  ;;  %v24_v11 = vand.u32 127, %v23_v3 }
  0x98   :  { %v119_v25 = vadd.s32 %v118_v19, %v108_v18 }
  0x99   :  { %v97_v23 = vadd.s32 %v96_v14, %v86_v12  ;;  %vm25_vm1 = vcmp.lt.s32.totalorder %v24_v11, 16 }
  0x9a   :  { %v120_v16 = vadd.s32 %v119_v25, %v110_v24 }
  0x9b   :  { %v98_v26 = vadd.s32 %v97_v23, %v88_v22 }
  0x9c   :  { %v124_v1 = vadd.s32 1, %v120_v16 }
  0x9d   :  { %vm123_vm9 = vc.u32 %v98_v26, %v117_v27  ;;  %v122_v15 = vadd.s32 %v117_v27, %v98_v26 }
  0x9e   :  { %v125_v29 = vsel %vm123_vm9, %v124_v1, %v120_v16 }
  0x9f   :  { %v126_v30 = vadd.s32 %v125_v29, %v121_v28 }
  0xa1   :  { %v127_v31 = vadd.s32 536870912, %v126_v30 }
  0xa3   :  { %v128_v32 = vshrl.u32 %v127_v31, 30 }
  0xa5   :  { %v129_v34 = vshll.u32 %v128_v32, 30  ;;  %v152_v53 = vsub.s32 4, %v128_v32 }
  0xa7   :  { %v130_v33 = vsub.s32 %v126_v30, %v129_v34  ;;  %v153_v58 = vsel %vm30_vm12, %v152_v53, %v128_v32 }
  0xa8   :  { %v155_v62 = vsel %vm29_vm13, 0, %v153_v58 }
  0xa9   :  { %vm131_vm10 = vcmp.lt.s32.totalorder %v130_v33, 0  ;;  %v132_v35 = vsub.s32 0, %v130_v33  ;;  %v172_v5 = vadd.s32 3, %v155_v62  ;;  %v327_v10 = vand.u32 3, %v155_v62 }
  0xab   :  { %v133_v36 = vsel %vm131_vm10, %v132_v35, %v130_v33  ;;  %v173_v12 = vand.u32 3, %v172_v5  ;;  %vm328_vm14 = vcmp.lt.s32.totalorder %v327_v10, 2  ;;  %vm329_vm15 = vcmp.eq.s32.totalorder %v327_v10, 0 }
  0xac   :  { %v134_v38 = vclz %v133_v36  ;;  %vm332_vm0 = vcmp.eq.s32.totalorder %v327_v10, 2 }
  0xad   :  { %vm174_vm2 = vcmp.lt.s32.totalorder %v173_v12, 2  ;;  %vm175_vm3 = vcmp.eq.s32.totalorder %v173_v12, 0  ;;  %vm178_vm4 = vcmp.eq.s32.totalorder %v173_v12, 2 }
  0xae   :  { %v357_v39 = vadd.s32 4294967294, %v134_v38 }
  0xb0   :  { %vm358_vm11 = vcmp.lt.s32.totalorder %v357_v39, 0 }
  0xb1   :  { %v137_v40 = vsel %vm358_vm11, 0, %v357_v39 }
  0xb2   :  { %v138_v41 = vsub.s32 32, %v137_v40  ;;  %v142_v42 = vsub.s32 4294967266, %v137_v40  ;;  %v139_v43 = vshll.u32 %v130_v33, %v137_v40 }
  0xb4   :  { %v140_v44 = vshrl.u32 %v122_v15, %v138_v41  ;;  %v143_v45 = vadd.s32 127, %v142_v42 }
  0xb6   :  { %v141_v37 = vor.u32 %v140_v44, %v139_v43  ;;  %v144_v46 = vshll.u32 %v143_v45, 23 }
  0xb8   :  { %v145_v47 = vor.u32 4788187, %v144_v46  ;;  %v148_v49 = vcvt.s32.f32 %v141_v37 }
  0xba   :  { %v146_v48 = vand.u32 2147483647, %v145_v47 }
  0xbc   :  { %v149_v50 = vmul.f32 %v148_v49, %v146_v48 }
  0xbe   :  { %v150_v51 = vxor.u32 2147483648, %v149_v50 }
  0xc0   :  { %v151_v52 = vsel %vm30_vm12, %v150_v51, %v149_v50 }
  0xc1   :  { %v154_v54 = vsel %vm29_vm13, %v428_v4, %v151_v52 }
  0xc2   :  { %v156_v55 = vmul.f32 %v154_v54, %v154_v54 }
  0xc4   :  { %v164_v56 = vmul.f32 -0.00019511016, %v156_v55  ;;  %v157_v57 = vmul.f32 -0.001358992, %v156_v55 }
  0xc6   :  { %v165_v59 = vadd.f32 0.008332121, %v164_v56  ;;  %v158_v60 = vadd.f32 0.041655596, %v157_v57 }
  0xc8   :  { %v166_v61 = vmul.f32 %v165_v59, %v156_v55  ;;  %v159_v63 = vmul.f32 %v158_v60, %v156_v55 }
  0xca   :  { %v167_v0 = vadd.f32 -0.16666654, %v166_v61  ;;  %v160_v2 = vadd.f32 -0.4999988, %v159_v63 }
  0xcc   :  { %v168_v6 = vmul.f32 %v167_v0, %v156_v55  ;;  %v161_v7 = vmul.f32 %v160_v2, %v156_v55 }
  0xce   :  { %v169_v8 = vadd.f32 1.0, %v168_v6  ;;  %v162_v9 = vadd.f32 1.0, %v161_v7 }
  0xd0   :  { %v170_v14 = vmul.f32 %v169_v8, %v154_v54  ;;  %v179_v17 = vxor.u32 2147483648, %v162_v9 }
  0xd2   :  { %v176_v18 = vxor.u32 2147483648, %v170_v14  ;;  %v180_v20 = vsel %vm178_vm4, %v179_v17, %v170_v14  ;;  %v334_v22 = vsel %vm332_vm0, %v179_v17, %v170_v14 }
  0xd4   :  { %v177_v19 = vsel %vm175_vm3, %v162_v9, %v176_v18  ;;  %v331_v21 = vsel %vm329_vm15, %v162_v9, %v176_v18 }
  0xd5   :  { %v181_v23 = vsel %vm174_vm2, %v177_v19, %v180_v20  ;;  %v335_v24 = vsel %vm328_vm14, %v331_v21, %v334_v22 }
  0xd6   :  { %v182_v25 = vsel %vm171_vm5, nan, %v181_v23  ;;  %v336_v26 = vsel %vm171_vm5, nan, %v335_v24 }
  0xd7   :  { %v337_v27 = vsel %vm25_vm1, %v182_v25, %v336_v26 }
  0xd8   :  { %339 = vst.msk [vmem:[#allocation2] sm:$0xff] %vm338_vm6, %v337_v27 }
  0xd9   :  { %350 = dma.vmem_to_hbm [thread:$0]  %s346_s1, 128, %s348_s15, [#allocation3]  }
  0xda   :  { %396 = dma.done.wait [#allocation3], 128  }
  0xdb   :  { %397 = vsyncadd [#allocation3], 4294967168 }
  0xdc   :  { %355 = vsyncpa [#allocation3], 1 }

</bundles_post_ra>
